<compile_context>
chip_gen: v7x
topology: tpu7x:2x2x1
jax: 0.10.0
libtpu: 0.0.40
codegen_flags: <defaults>
</compile_context>

<pallas_src>
import functools

import jax
import jax.numpy as jnp
from jax import lax
from jax.experimental import pallas as pl
from jax.experimental.pallas import tpu as pltpu

EPS = 1e-5
_TARGET_BLOCK_BYTES = 4 * 1024 * 1024


def _choose_c_blk(C, HW, target_bytes=_TARGET_BLOCK_BYTES):
    """Channel tile: a divisor of C that is C itself or a multiple of 8."""
    bytes_per_ch = HW * 4  # f32 working copy dominates the block footprint
    valid = [d for d in range(1, C + 1)
             if C % d == 0 and (d == C or d % 8 == 0)]
    fits = [d for d in valid if d * bytes_per_ch <= target_bytes]
    if fits:
        return fits[-1]
    return valid[0]  # may exceed target for huge H*W; vmem_limit scales with it


def bn_stats_kernel(x_ref, s_ref):
    """x_ref: (1, C_blk, HW) -> s_ref: (1, 1, 2, C_blk) = [sum; sum_sq] over HW."""
    xf = x_ref[...].astype(jnp.float32)
    s = jnp.sum(xf, axis=-1)           # (1, C_blk)
    q = jnp.sum(xf * xf, axis=-1)      # (1, C_blk)
    s_ref[...] = jnp.concatenate([s, q], axis=0)[None, None, :, :]


def ibn_apply_kernel(x_ref, ps_ref, pb_ref, o_ref, *, half):
    """Fused IN + BN apply.

    x_ref : (1, C_blk, HW)  activation block for one batch element
    ps_ref: (1, C_blk, 1)   gamma (IN channels) / precomputed BN scale
    pb_ref: (1, C_blk, 1)   beta  (IN channels) / precomputed BN bias
    """
    xf = x_ref[...].astype(jnp.float32)
    c_blk = x_ref.shape[1]

    # Per-(n, c) instance statistics over H*W (two-pass variance for numerical
    # safety; the block is VMEM-resident so the re-read is cheap).
    mu = jnp.mean(xf, axis=-1, keepdims=True)                      # (1, C_blk, 1)
    var = jnp.mean(jnp.square(xf - mu), axis=-1, keepdims=True)    # biased var

    g = ps_ref[...]
    b = pb_ref[...]
    in_scale = g * lax.rsqrt(var + EPS)
    in_bias = b - mu * in_scale

    c0 = pl.program_id(0) * c_blk
    cidx = c0 + lax.broadcasted_iota(jnp.int32, (1, c_blk, 1), 1)
    is_in = cidx < half
    scale = jnp.where(is_in, in_scale, g)
    bias = jnp.where(is_in, in_bias, b)

    o_ref[...] = (xf * scale + bias).astype(o_ref.dtype)


def ibn_forward(x, gamma_in, beta_in, gamma_bn, beta_bn):
    """x: (N, C, H, W). Returns (N, C, H, W)."""
    N, C, H, W = x.shape
    half = int(gamma_in.shape[0])
    c_bn = C - half
    HW = H * W

    x3 = x.reshape(N, C, HW)  # layout-preserving (free) reshape
    c_blk = _choose_c_blk(C, HW)
    n_cblk = C // c_blk
    blk_f32_bytes = c_blk * HW * 4
    vmem_limit = int(min(48 * 1024 * 1024,
                         max(32 * 1024 * 1024, 10 * blk_f32_bytes)))

    # ---- BN statistics pass: per-(n, channel-block) sum / sum-of-squares ----
    if c_bn > 0:
        # Skip the IN channels entirely when the split is tile-aligned.
        c_start_blk = half // c_blk if half % c_blk == 0 else 0
        stat_nblk = n_cblk - c_start_blk
        stat_c = stat_nblk * c_blk

        stats = pl.pallas_call(
            bn_stats_kernel,
            out_shape=jax.ShapeDtypeStruct((N, stat_nblk, 2, c_blk), jnp.float32),
            grid=(stat_nblk, N),
            in_specs=[pl.BlockSpec((1, c_blk, HW),
                                   lambda c, n: (n, c_start_blk + c, 0))],
            out_specs=pl.BlockSpec((1, 1, 2, c_blk), lambda c, n: (n, c, 0, 0)),
            compiler_params=pltpu.CompilerParams(
                dimension_semantics=("parallel", "parallel"),
                vmem_limit_bytes=vmem_limit),
        )(x3)

        # Tiny (C,)-sized wrapper math: reduce partials over N and fold affine.
        sums = jnp.transpose(stats.sum(axis=0), (1, 0, 2)).reshape(2, stat_c)
        off = half - c_start_blk * c_blk
        count = float(N * HW)
        mu_bn = sums[0, off:off + c_bn] / count
        # Single-pass E[x^2] - mu^2 (flagged numerics caveat for huge-mean data).
        var_bn = jnp.maximum(sums[1, off:off + c_bn] / count - mu_bn * mu_bn, 0.0)
        bn_scale = gamma_bn.astype(jnp.float32) * lax.rsqrt(var_bn + EPS)
        bn_bias = beta_bn.astype(jnp.float32) - mu_bn * bn_scale

    # ---- Per-channel parameter vectors for the fused apply kernel ----
    parts_s, parts_b = [], []
    if half > 0:
        parts_s.append(gamma_in.astype(jnp.float32))
        parts_b.append(beta_in.astype(jnp.float32))
    if c_bn > 0:
        parts_s.append(bn_scale)
        parts_b.append(bn_bias)
    p_scale = jnp.concatenate(parts_s).reshape(1, C, 1)
    p_bias = jnp.concatenate(parts_b).reshape(1, C, 1)

    # ---- Fused apply: writes the full (N, C, HW) output, no concat needed ----
    out = pl.pallas_call(
        functools.partial(ibn_apply_kernel, half=half),
        out_shape=jax.ShapeDtypeStruct((N, C, HW), x.dtype),
        grid=(n_cblk, N),
        in_specs=[
            pl.BlockSpec((1, c_blk, HW), lambda c, n: (n, c, 0)),
            pl.BlockSpec((1, c_blk, 1), lambda c, n: (0, c, 0)),
            pl.BlockSpec((1, c_blk, 1), lambda c, n: (0, c, 0)),
        ],
        out_specs=pl.BlockSpec((1, c_blk, HW), lambda c, n: (n, c, 0)),
        compiler_params=pltpu.CompilerParams(
            dimension_semantics=("parallel", "parallel"),
            vmem_limit_bytes=vmem_limit),
    )(x3, p_scale, p_bias)

    return out.reshape(N, C, H, W)


def ibn_reference(x, gamma_in, beta_in, gamma_bn, beta_bn):
    """Pure-JAX reference matching PyTorch IBN forward (training mode)."""
    half = gamma_in.shape[0]
    x_in = x[:, :half]
    x_bn = x[:, half:]

    mu = jnp.mean(x_in, axis=(2, 3), keepdims=True)
    var = jnp.mean(jnp.square(x_in - mu), axis=(2, 3), keepdims=True)
    y_in = (x_in - mu) / jnp.sqrt(var + EPS)
    y_in = y_in * gamma_in[None, :, None, None] + beta_in[None, :, None, None]

    mu_b = jnp.mean(x_bn, axis=(0, 2, 3), keepdims=True)
    var_b = jnp.mean(jnp.square(x_bn - mu_b), axis=(0, 2, 3), keepdims=True)
    y_bn = (x_bn - mu_b) / jnp.sqrt(var_b + EPS)
    y_bn = y_bn * gamma_bn[None, :, None, None] + beta_bn[None, :, None, None]

    return jnp.concatenate([y_in, y_bn], axis=1)


if __name__ == "__main__":
    planes, ratio = 4, 0.5
    half = int(planes * ratio)
    N, H, W = 2, 16, 16

    key = jax.random.PRNGKey(0)
    kx, kgi, kbi, kgb, kbb = jax.random.split(key, 5)
    x = jax.random.normal(kx, (N, planes, H, W), dtype=jnp.float32)

    # PyTorch defaults would be ones/zeros; perturb slightly to exercise affine.
    gamma_in = 1.0 + 0.1 * jax.random.normal(kgi, (half,), dtype=jnp.float32)
    beta_in = 0.1 * jax.random.normal(kbi, (half,), dtype=jnp.float32)
    gamma_bn = 1.0 + 0.1 * jax.random.normal(kgb, (planes - half,), dtype=jnp.float32)
    beta_bn = 0.1 * jax.random.normal(kbb, (planes - half,), dtype=jnp.float32)

    out = ibn_forward(x, gamma_in, beta_in, gamma_bn, beta_bn)
    out = jax.block_until_ready(out)

    ref = ibn_reference(x, gamma_in, beta_in, gamma_bn, beta_bn)
    assert out.shape == (N, planes, H, W)
    assert jnp.allclose(out, ref, atol=1e-4, rtol=1e-4), "mismatch vs reference"

    print("KERNEL_OK")
</pallas_src>

<mosaic_0001>
module attributes {stable_mosaic.version = 11 : i64} {
  func.func @bn_stats_kernel(%arg0: i32, %arg1: i32, %arg2: memref<1x4x256xf32, #tpu.memory_space<vmem>>, %arg3: memref<1x1x2x4xf32, #tpu.memory_space<vmem>>) attributes {dimension_semantics = [#tpu.dimension_semantics<parallel>, #tpu.dimension_semantics<parallel>], iteration_bounds = array<i64: 1, 2>, scalar_prefetch = 0 : i64, scratch_operands = 0 : i64, tpu.core_type = #tpu.core_type<tc>, window_params = [{transform_indices = @transform_0, window_bounds = array<i64: 1, 4, 256>}, {transform_indices = @transform_1, window_bounds = array<i64: 1, 1, 2, 4>}]} {
    %c0 = arith.constant 0 : index
    %c0_0 = arith.constant 0 : index
    %c0_1 = arith.constant 0 : index
    %0 = vector.load %arg2[%c0, %c0_0, %c0_1] : memref<1x4x256xf32, #tpu.memory_space<vmem>>, vector<1x4x256xf32>
    %cst = arith.constant dense<0.000000e+00> : vector<1x4xf32>
    %1 = vector.multi_reduction <add>, %0, %cst [2] : vector<1x4x256xf32> to vector<1x4xf32>
    %2 = arith.mulf %0, %0 : vector<1x4x256xf32>
    %cst_2 = arith.constant dense<0.000000e+00> : vector<1x4xf32>
    %3 = vector.multi_reduction <add>, %2, %cst_2 [2] : vector<1x4x256xf32> to vector<1x4xf32>
    %4 = tpu.concatenate %1, %3 in 0 : vector<1x4xf32>, vector<1x4xf32> -> vector<2x4xf32>
    %5 = vector.shape_cast %4 : vector<2x4xf32> to vector<1x1x2x4xf32>
    %c0_3 = arith.constant 0 : index
    %c0_4 = arith.constant 0 : index
    %c0_5 = arith.constant 0 : index
    %c0_6 = arith.constant 0 : index
    %6 = vector.load %arg3[%c0_3, %c0_4, %c0_5, %c0_6] : memref<1x1x2x4xf32, #tpu.memory_space<vmem>>, vector<1x1x2x4xf32>
    tpu.vector_store %arg3[%c0_3, %c0_4, %c0_5, %c0_6], %5 {strides = array<i32>} : memref<1x1x2x4xf32, #tpu.memory_space<vmem>>, vector<1x1x2x4xf32>,
    return
  }
  func.func @transform_0(%arg0: i32, %arg1: i32) -> (i32, i32, i32) {
    %c0_i32 = arith.constant 0 : i32
    %0 = arith.addi %c0_i32, %arg0 : i32
    %c0_i32_0 = arith.constant 0 : i32
    %c0_i32_1 = arith.constant 0 : i32
    return %arg1, %0, %c0_i32_0 : i32, i32, i32
  }
  func.func @transform_1(%arg0: i32, %arg1: i32) -> (i32, i32, i32, i32) {
    %c0_i32 = arith.constant 0 : i32
    %c0_i32_0 = arith.constant 0 : i32
    %c0_i32_1 = arith.constant 0 : i32
    return %arg1, %arg0, %c0_i32, %c0_i32_0 : i32, i32, i32, i32
  }
}

</mosaic_0001>

<bundles_post_ra>
// kernel: tpu_custom_call.1
= control target key start
LH: loop header
LB: loop body
LE: loop exit
PB: predicated region body
PF: predicated region fallthrough
CT: control target
= control target key end

     0   :  { %6 = vsyncpa [#allocation3], 0  ;;  %s662_s0 = inlined_call_operand.hbm [shape: f32[2,4,256], index: 0, kind: input, shape index: {}]   ;;  %s663_s1 = inlined_call_operand.hbm [shape: f32[2,1,2,4], index: 1, kind: output, shape index: {}]  }
   0x1   :  { %8 = vsyncpa [#allocation3 + $0x1], 0 }
   0x2   :  { %9 = vsyncpa [#allocation4], 0 }
   0x3   :  { %11 = vsyncpa [#allocation4 + $0x1], 0  ;;  %s489_s6 = smov 0   ;;  %s491_s7 = smov 0  }
   0x4   :  { %s493_s8 = smov 0   ;;  %s495_s9 = smov 0  }
   0x5   :  { %s497_s10 = smov 0   ;;  %s499_s11 = smov 0  }
   0x6 LB: > { %s285_s12 = sadd.s32 4294967295, %s475_s11   ;;  %s286_s13 = sadd.s32 4294967294, %s475_s11   ;;  %s475_s11 = sphi %s499_s11, %s17_s11   ;;  %s471_s10 = sphi %s497_s10, %s679_s10   ;;  %s467_s9 = sphi %s495_s9, %s678_s9   ;;  %s463_s8 = sphi %s493_s8, %s677_s8   ;;  %s459_s7 = sphi %s491_s7, %s676_s7   ;;  %s455_s6 = sphi %s489_s6, %s675_s6  }
   0x7   : > { %s26_s14 = sadd.s32 1, %s471_s10  ;;  %s38_s15 = sadd.s32 1, %s463_s8 }
   0x8   : > { %p27_p0 = scmp.ge.s32.totalorder %s26_s14, 2  ;;  %p45_p1 = scmp.ne.s32.totalorder %s463_s8, %s459_s7 }
   0x9   : > { %p46_p2 = scmp.eq.s32.totalorder %s475_s11, 0  ;;  %p51_p3 = scmp.ne.s32.totalorder %s459_s7, %s455_s6 }
   0xa   : > { %s681_s14 = smov (%p27_p0, %s26_s14), 0  ;;  %p52_p5 = scmp.eq.s32.totalorder %s285_s12, 0 }
   0xb   : > { %p530_p4 = por %p46_p2, %p45_p1  ;;  %s33_s17 = ssub.s32 %s471_s10, %s681_s14 }
   0xc   : > { %p77_p6 = scmp.eq.s32.totalorder %s285_s12, 1  ;;  %p36_p7 = scmp.eq.s32.totalorder %s33_s17, 0 }
   0xd   : > { %p536_p8 = por %p52_p5, %p51_p3  ;;  %p83_p10 = scmp.eq.s32.totalorder %s286_s13, 1 }
   0xe   : > { %p540_p9 = por %p77_p6, %p45_p1  ;;  %p312_p13 = scmp.lt.s32.totalorder %s475_s11, 2 }
   0xf   : > { %s545_s20 = scalar_select %p36_p7, %s463_s8, %s38_s15  }
  0x10   : > { %s667_s19 = scalar_select %p540_p9, 1, 0 }
  0x11   : > { %p547_p11 = por %p83_p10, %p51_p3  ;;  %s103_s22 = sand.u32 1, %s463_s8  }
  0x12   : > { %s289_s23 = sshll.u32 %s103_s22, 3  ;;  %s299_s24 = sshll.u32 %s471_s10, 7 }
  0x13   : > { %s668_s21 = scalar_select %p547_p11, 1, 0 }
  0x14   : > { %s558_s27 = scalar_lea.hbm %s662_s0, %s299_s24  ;;  %s107_s28 = scalar_lea.vmem [#allocation2], %s289_s23 }
  0x15   : > { %s117_s29 = sshll.u32 %s107_s28, 4  ;;  %p564_p0 = pnand %p312_p13, %p530_p4  ;;  %s560_s29 = int_to_ptr.vmem [resolvable:$true] %s117_s29 }
  0x16   : > { %s104_s2 = scalar_lea.sflag [#allocation3], %s103_s22  ;;  %s363_s3 = scalar_lea.hbm %s558_s27, 128 }
  0x17   : > { %p364_p3 = scmp.ne.s32.totalorder %s558_s27, %s363_s3  ;;  %p365_p5 = pneg %p564_p0 }
  0x18   : > { %s368_s12 = scalar_lea.hbm %s662_s0, 256  ;;  %p369_p4 = scmp.lt.u32.totalorder %s558_s27, %s662_s0 }
  0x19   : > { %p366_p6 = pnand %p365_p5, %p364_p3  ;;  %p370_p10 = scmp.lt.u32.totalorder %s368_s12, %s363_s3 }
  0x1a   : > { %p372_p12 = scmp.lt.u32.totalorder %s363_s3, %s558_s27 }
  0x1b   : > { %p367_p7 = pneg %p366_p6  ;;  %p371_p13 = por %p370_p10, %p369_p4 }
  0x1d   : > { %p373_p1 = por %p372_p12, %p371_p13 }
  0x1f   : > { %p374_p2 = pnand %p373_p1, %p367_p7 }
  0x21   : > { %377 = shalt.err (!%p374_p2)
}
  0x22   : > { %s378_s16 = scalar_lea.vmem %s560_s29, 128  ;;  %s477_s17 = smov [#allocation2]  }
  0x23   : > { %p379_p3 = scmp.ne.s32.totalorder %s560_s29, %s378_s16  ;;  %s383_s22 = sshll.u32 %s477_s17, 4  ;;  %s384_s22 = int_to_ptr.vmem [resolvable:$false] %s383_s22 }
  0x24   : > { %s385_s23 = scalar_lea.vmem %s384_s22, 256  ;;  %p386_p9 = scmp.lt.s32.totalorder %s560_s29, %s384_s22 }
  0x25   : > { %p381_p6 = pnand %p379_p3, %p365_p5  ;;  %p387_p4 = scmp.lt.s32.totalorder %s385_s23, %s378_s16 }
  0x27   : > { %p382_p11 = pneg %p381_p6  ;;  %p388_p10 = por %p387_p4, %p386_p9 }
  0x29   : > { %p389_p12 = pnand %p388_p10, %p382_p11 }
  0x2b   : > { %392 = shalt.err (!%p389_p12)
}
  0x2c   : > { %307 = dma.hbm_to_vmem [thread:$0]  (!%p564_p0), %s558_s27, 128, %s560_s29, %s104_s2  }
  0x2d   : > { %p670_p1 = scmp.lt.s32.totalorder %s475_s11, 3  ;;  %p671_p2 = scmp.ge.s32.totalorder %s475_s11, 1 }
  0x2f   : > { %p123_p5 = pnand %p671_p2, %p670_p1 }
  0x30   : > { %s600_s24 = sand.u32 (!%p123_p5), 1, %s459_s7  }
  0x31   : > { %126 = sbr.rel (%p123_p5) target bundleno = 226 (0xe2), region = 24  ;;  %s293_s25 = sshll.u32 (!%p123_p5), %s600_s24, 3 }
  0x32   : > { %s129_s26 = scalar_lea.sflag (!%p123_p5), [#allocation3], %s600_s24  ;;  %s132_s28 = scalar_lea.vmem (!%p123_p5), [#allocation2], %s293_s25 }
  0x38   : > { %446 = dma.done.wait (%p536_p8), %s129_s26, 128  }
  0x39   : > { %448 = vsyncadd (%p536_p8), %s129_s26, 4294967168  ;;  %vm155_vm0 = vcmask 1043456   ;;  %v151_v0 = vld [vmem:[%s132_s28] sm:$0xff]  ;;  %v171_v10 = vlaneseq  ;;  %s294_s18 = sshll.u32 %s600_s24, 1  ;;  %s296_s27 = sshll.u32 %s467_s9, 5  ;;  %vm184_vm1 = vcmask 1040384  }
  0x3a   : > { %v153_v1 = vcombine.high %v151_v0, %v151_v0  ;;  %v156_v2 = vsel %vm155_vm0, %v151_v0, 0.0  ;;  %v161_v3 = vmul.f32 %v151_v0, %v151_v0  ;;  %s150_s29 = scalar_lea.vmem [#allocation5], %s294_s18  ;;  %vm186_vm2 = vcmask 25600   ;;  %s613_s4 = scalar_lea.hbm %s663_s1, %s296_s27 }
  0x3b   : > { %v172_v11 = vand.u32 127, %v171_v10  ;;  %v174_v12 = vshrl.u32 %v171_v10, 7  ;;  %s203_s30 = sshll.u32 %s150_s29, 4  ;;  %s189_s9 = scalar_lea.sflag [#allocation4], %s600_s24  ;;  %s615_s30 = int_to_ptr.vmem [resolvable:$true] %s203_s30 }
  0x3c   : > { %v157_v4 = vsel %vm155_vm0, %v153_v1, 0.0  ;;  %v163_v5 = vcombine.high %v161_v3, %v161_v3  ;;  %v165_v6 = vsel %vm155_vm0, %v161_v3, 0.0  ;;  %s393_s5 = scalar_lea.vmem %s615_s30, 32  ;;  %p672_p9 = scmp.ne.s32.totalorder %s667_s19, 0 }
  0x3d   : > { %v158_v7 = vadd.f32 %v157_v4, %v156_v2  ;;  %v175_v14 = vsub.s32 %v172_v11, %v174_v12  ;;  %p394_p8 = scmp.ne.s32.totalorder %s615_s30, %s393_s5  ;;  %s478_s12 = smov [#allocation5]  }
  0x3e   : > { %v166_v8 = vsel %vm155_vm0, %v163_v5, 0.0  ;;  %s397_s13 = sshll.u32 %s478_s12, 4  ;;  %s398_s13 = int_to_ptr.vmem [resolvable:$false] %s397_s13 }
  0x3f   : > { %159 = vadd.xlane.f32.xlu0 %v158_v7  ;;  %v167_v9 = vadd.f32 %v166_v8, %v165_v6  ;;  %p395_p11 = pnand %p394_p8, %p672_p9  ;;  %s399_s15 = scalar_lea.vmem %s398_s13, 64 }
  0x40   : > { %p400_p7 = scmp.lt.s32.totalorder %s615_s30, %s398_s13  ;;  %p401_p13 = scmp.lt.s32.totalorder %s399_s15, %s393_s5 }
  0x41   : > { %p396_p0 = pneg %p395_p11 }
  0x42   : > { %p402_p3 = por %p401_p13, %p400_p7 }
  0x43   : > { %168 = vadd.xlane.f32.xlu0 %v167_v9 }
  0x44   : > { %p403_p6 = pnand %p402_p3, %p396_p0 }
  0xcc   : > { %v160_v13 = vpop.xlane.xlu0 %159 }
  0xcd   : > { %v176_v16 = vrot.slane %v160_v13, %v175_v14 }
  0xd0   : > { %v169_v15 = vpop.xlane.xlu0 %168 }
  0xd1   : > { %v182_v17 = vrot.slane %v169_v15, %v175_v14 }
  0xd3   : > { %v185_v18 = vsel %vm184_vm1, %v176_v16, %v182_v17 }
  0xd4   : > { %187 = vst.msk [vmem:[%s150_s29] sm:$0x3] %vm186_vm2, %v185_v18 }
  0xd5   : > { %406 = shalt.err (!%p403_p6)
}
  0xd6   : > { %s407_s16 = scalar_lea.hbm %s613_s4, 32  ;;  %s411_s23 = scalar_lea.hbm %s663_s1, 64 }
  0xd7   : > { %p408_p4 = scmp.ne.s32.totalorder %s613_s4, %s407_s16  ;;  %p412_p1 = scmp.lt.u32.totalorder %s613_s4, %s663_s1 }
  0xd8   : > { %p413_p2 = scmp.lt.u32.totalorder %s411_s23, %s407_s16  ;;  %p415_p8 = scmp.lt.u32.totalorder %s407_s16, %s613_s4 }
  0xd9   : > { %p409_p10 = pnand %p408_p4, %p672_p9 }
  0xda   : > { %p414_p5 = por %p413_p2, %p412_p1 }
  0xdb   : > { %p410_p12 = pneg %p409_p10 }
  0xdc   : > { %p416_p11 = por %p415_p8, %p414_p5 }
  0xde   : > { %p417_p0 = pnand %p416_p11, %p410_p12 }
  0xe0   : > { %420 = shalt.err (!%p417_p0)
}
  0xe1   : > { %302 = dma.vmem_to_hbm [thread:$0]  (%p672_p9), %s615_s30, 32, %s613_s4, %s189_s9  }
  0xe2 PF: > { %s215_s26 = sand.u32 1, %s455_s6   ;;  %p673_p7 = scmp.ne.s32.totalorder %s668_s21, 0 }
  0xe3   : > { %p674_p13 = scmp.ge.s32.totalorder %s475_s11, 2  ;;  %s216_s28 = scalar_lea.sflag [#allocation4], %s215_s26 }
  0xe5   : > { %p309_p3 = pnand %p674_p13, %p673_p7 }
  0xe7   : > { %450 = dma.done.wait (!%p309_p3), %s216_s28, 32  }
  0xe8   : > { %452 = vsyncadd (!%p309_p3), %s216_s28, 4294967264  ;;  %s17_s11 = sadd.s32 1, %s475_s11   ;;  %s675_s6 = smov %s459_s7 }
  0xe9   : > { %p14_p6 = scmp.ge.s32.totalorder %s17_s11, 4   ;;  %s676_s7 = smov %s463_s8 }
  0xea   : > { %s677_s8 = smov %s545_s20  ;;  %s678_s9 = smov %s471_s10 }
  0xeb   : > { %s679_s10 = smov %s681_s14  ;;  %16 = sbr.rel (!%p14_p6) target bundleno = 6 (0x6), region = 69 }
  0xf2   :  { %221 = vsyncpa [#allocation3], 1 }
  0xf3   :  { %223 = vsyncpa [#allocation3 + $0x1], 1 }
  0xf4   :  { %224 = vsyncpa [#allocation4], 1 }
  0xf5   :  { %226 = vsyncpa [#allocation4 + $0x1], 1 }

</bundles_post_ra>
